<compile_context>
chip_gen: v6e
topology: v6e:2x2x1
jax: 0.10.0
libtpu: 0.0.40
codegen_flags: <defaults>
</compile_context>

<pallas_src>
import functools
import math

import jax
import jax.numpy as jnp
import numpy as np
from jax.experimental import pallas as pl
from jax.experimental.pallas import tpu as pltpu


def fused_attention_kernel(x_ref, w_ref, b_ref, seg_ref, bcast_ref,
                           cos_ref, sin_ref, o_ref, *, num_heads, head_dim):
    """Fused QKV projection + full-width RoPE + per-position head x head attention.

    x_ref     : (T, D)       bf16  activation tile (streamed)
    w_ref     : (D, 3D)      bf16  fused qkv weight, columns [q_e|q_o|k_e|k_o|v]
    b_ref     : (1, 3D)      f32   fused qkv bias (same permutation, q scaled)
    seg_ref   : (D/2, H)     f32   0/1 head-block indicator (segment sum on MXU)
    bcast_ref : (H, D)       f32   0/1 head-block indicator (per-head broadcast)
    cos_ref   : (T, hd//2)   f32   per-row RoPE cos table
    sin_ref   : (T, hd//2)   f32   per-row RoPE sin table
    o_ref     : (T, D)       f32   output tile (lane-dense)
    """
    H, hd = num_heads, head_dim
    hd2 = hd // 2
    D = H * hd
    D2 = D // 2
    f32 = jnp.float32

    # 1) Fused QKV projection: one bf16 x bf16 -> f32 MXU matmul.
    qkv = jnp.dot(x_ref[...], w_ref[...], preferred_element_type=f32) + b_ref[...]

    # Columns were permuted at trace time to [q_even | q_odd | k_even | k_odd | v]
    # ("even"/"odd" = RoPE pair components, grouped by head inside each half),
    # with 1/sqrt(hd) already folded into the q columns and bias.
    q_e = qkv[:, 0:D2]
    q_o = qkv[:, D2:D]
    k_e = qkv[:, D:D + D2]
    k_o = qkv[:, D + D2:2 * D]
    v = qkv[:, 2 * D:3 * D]

    # 2) Full-lane-width RoPE (pure VPU; no per-head loop, no pair-swap matmul).
    cos_t = cos_ref[...]
    sin_t = sin_ref[...]
    cos_w = jnp.concatenate([cos_t] * H, axis=1)      # (T, D2), hoisted
    sin_w = jnp.concatenate([sin_t] * H, axis=1)
    q_re = q_e * cos_w - q_o * sin_w
    q_ro = q_e * sin_w + q_o * cos_w
    k_re = k_e * cos_w - k_o * sin_w
    k_ro = k_e * sin_w + k_o * cos_w

    seg = seg_ref[...]        # (D2, H)
    bcast = bcast_ref[...]    # (H, D)

    # 3) Per-position head x head scores (the torch module never swaps L and H,
    #    so attention is (B, L, H, H)).  Loop over the relative head offset r:
    #    a roll by r*hd2 aligns key head (h -+ r) % H with query head h for all
    #    h at once; the hd-deep reduction is a tiny exact-f32 MXU contraction
    #    against the indicator matrix.  No narrow lane slices, no concats, no
    #    cross-lane (XLU) reductions.  The roll direction cancels between the
    #    k and v rolls, so correctness does not depend on its sign convention.
    num_rows = x_ref.shape[0]
    s_list = []
    s_max = None
    for r in range(H):
        if r == 0:
            ke_r, ko_r = k_re, k_ro
        else:
            ke_r = pltpu.roll(k_re, r * hd2, axis=1)
            ko_r = pltpu.roll(k_ro, r * hd2, axis=1)
        prod = q_re * ke_r + q_ro * ko_r                           # (T, D2)
        s_r = jnp.dot(prod, seg, preferred_element_type=f32)       # (T, H)
        s_list.append(s_r)
        s_max = s_r if s_max is None else jnp.maximum(s_max, s_r)

    # 4) Softmax over key heads + weighted sum of v, accumulated full-width.
    denom = jnp.zeros_like(s_max)
    acc = jnp.zeros((num_rows, D), dtype=f32)
    for r in range(H):
        e_r = jnp.exp(s_list[r] - s_max)                           # (T, H)
        denom = denom + e_r
        v_r = v if r == 0 else pltpu.roll(v, r * hd, axis=1)
        acc = acc + jnp.dot(e_r, bcast, preferred_element_type=f32) * v_r

    # approx reciprocal (EUP): ~1e-3 relative error on the attention weights.
    inv = pl.reciprocal(denom, approx=True)                        # (T, H)
    out = acc * jnp.dot(inv, bcast, preferred_element_type=f32)
    o_ref[...] = out.astype(o_ref.dtype)                           # lane-dense store


def cached_attention_forward(x, w_qkv, b_qkv, num_heads, *, block_n=None):
    """Pallas implementation of CachedAttention.forward(x) (use_cache=False)."""
    # TODO(synk): the stateful KV cache across calls (use_cache=True /
    # clear_cache) is inference-loop state outside a single fused call.
    B, L, D = x.shape
    H = num_heads
    assert D % H == 0, "dim must be divisible by num_heads"
    hd = D // H
    assert hd % 2 == 0, "head_dim must be even for RoPE"
    hd2 = hd // 2
    D2 = D // 2
    N = B * L
    f32 = jnp.float32
    scale = 1.0 / math.sqrt(hd)

    # ---- trace-time weight prep --------------------------------------------
    # torch Linear: y = x @ W.T + b, then chunk(3).  q/k output columns are
    # permuted to [all heads' even RoPE components | all heads' odd ones] so
    # in-kernel RoPE is plain full-width VPU math; the head x head score is
    # invariant to a shared permutation of q and k, and v / the output keep
    # the original order, so the result matches torch (up to bf16 rounding).
    idx = np.arange(D).reshape(H, hd)
    perm_a = np.concatenate([idx[:, 0::2].reshape(-1), idx[:, 1::2].reshape(-1)])

    wq = w_qkv[:D].T[:, perm_a] * scale          # fold 1/sqrt(hd) into q
    wk = w_qkv[D:2 * D].T[:, perm_a]
    wv = w_qkv[2 * D:].T
    w_fused = jnp.concatenate([wq, wk, wv], axis=1).astype(jnp.bfloat16)   # (D, 3D)

    b_fused = jnp.concatenate([
        b_qkv[:D][perm_a] * scale,
        b_qkv[D:2 * D][perm_a],
        b_qkv[2 * D:],
    ]).reshape(1, 3 * D).astype(f32)

    # 0/1 head-block indicator matrices for the in-kernel MXU segment-sum and
    # per-head broadcast (exact in f32).
    heads = np.arange(H)
    seg_mat = jnp.asarray(
        (np.repeat(heads, hd2)[:, None] == heads[None, :]).astype(np.float32))  # (D2, H)
    bcast_mat = jnp.asarray(
        (heads[:, None] == np.repeat(heads, hd)[None, :]).astype(np.float32))   # (H, D)

    # RoPE tables, (N, hd2): positions repeat per batch (row = b*L + l); the
    # kernel broadcasts over heads, so table traffic is hd2/D of the x stream.
    inv_freq = 1.0 / (10000.0 ** (jnp.arange(0, hd, 2, dtype=f32) / hd))
    ang = jnp.arange(L, dtype=f32)[:, None] * inv_freq[None, :]                 # (L, hd2)
    cos_n = jnp.tile(jnp.cos(ang), (B, 1))
    sin_n = jnp.tile(jnp.sin(ang), (B, 1))

    # x streamed in bf16 (the MXU matmul is bf16 anyway): halves the x HBM read.
    x2 = x.reshape(N, D).astype(jnp.bfloat16)

    # ---- tiling --------------------------------------------------------------
    # block_n: MXU-friendly (512 / 256 when N allows), multiple of 8, and always
    # at least 2 (even) grid steps so both v7x TensorCores get work; pad N
    # instead of letting the block size collapse for awkward N.
    if block_n is None:
        if N >= 1024:
            block_n = 512
        elif N >= 512:
            block_n = 256
        else:
            block_n = max(8, (((N + 1) // 2) + 7) // 8 * 8)
    block_n = max(8, (block_n // 8) * 8)
    num_blocks = max(2, -(-N // block_n))
    if num_blocks % 2:
        num_blocks += 1
    n_pad = num_blocks * block_n
    if n_pad != N:
        pad = n_pad - N
        x2 = jnp.pad(x2, ((0, pad), (0, 0)))
        cos_n = jnp.pad(cos_n, ((0, pad), (0, 0)))
        sin_n = jnp.pad(sin_n, ((0, pad), (0, 0)))

    # VMEM-resident operands (constant index_map).  For large D single-buffer
    # them so the (D, 3D) bf16 weight is not double-buffered (decisive on
    # v7x's 64 MiB VMEM); at small D the default double-buffering is harmless.
    def resident_spec(shape):
        if D >= 512:
            return pl.BlockSpec(shape, lambda i: (0, 0),
                                pipeline_mode=pl.Buffered(1))
        return pl.BlockSpec(shape, lambda i: (0, 0))

    kernel = functools.partial(fused_attention_kernel, num_heads=H, head_dim=hd)

    cost = pl.CostEstimate(
        flops=2 * n_pad * D * 3 * D                          # QKV projection
        + H * (2 * n_pad * D2 * H + 2 * n_pad * H * D)       # indicator contractions
        + 14 * n_pad * D * H,                                # RoPE + products + accum
        transcendentals=n_pad * H * H,
        bytes_accessed=n_pad * D * 2 + n_pad * D * 4 + 2 * n_pad * hd2 * 4
        + D * 3 * D * 2 + 3 * D * 4 + (D2 * H + H * D) * 4)

    out = pl.pallas_call(
        kernel,
        out_shape=jax.ShapeDtypeStruct((n_pad, D), f32),
        grid=(num_blocks,),
        in_specs=[
            pl.BlockSpec((block_n, D), lambda i: (i, 0)),      # x tile (streamed bf16)
            resident_spec((D, 3 * D)),                         # fused qkv weight
            resident_spec((1, 3 * D)),                         # fused qkv bias
            resident_spec((D2, H)),                            # segment-sum indicator
            resident_spec((H, D)),                             # broadcast indicator
            pl.BlockSpec((block_n, hd2), lambda i: (i, 0)),    # cos tile
            pl.BlockSpec((block_n, hd2), lambda i: (i, 0)),    # sin tile
        ],
        out_specs=pl.BlockSpec((block_n, D), lambda i: (i, 0)),
        compiler_params=pltpu.CompilerParams(
            dimension_semantics=("parallel",),
            # 64 MiB is <= physical VMEM on v5e/v6e (128 MiB) and v7x (64 MiB);
            # keeps large block_n tiles + the resident weight in VMEM.
            vmem_limit_bytes=64 * 1024 * 1024),
        cost_estimate=cost,
    )(x2, w_fused, b_fused, seg_mat, bcast_mat, cos_n, sin_n)

    return out[:N].reshape(B, L, D)


def reference_forward(x, w_qkv, b_qkv, num_heads):
    """Pure-JAX replica of the torch module for verification."""
    B, L, D = x.shape
    H = num_heads
    hd = D // H
    qkv = x @ w_qkv.T + b_qkv
    q, k, v = jnp.split(qkv, 3, axis=-1)
    q = q.reshape(B, L, H, hd)
    k = k.reshape(B, L, H, hd)
    v = v.reshape(B, L, H, hd)

    inv_freq = 1.0 / (10000.0 ** (jnp.arange(0, hd, 2, dtype=jnp.float32) / hd))
    ang = jnp.arange(L, dtype=jnp.float32)[:, None] * inv_freq[None, :]
    c = jnp.cos(ang)[None, :, None, :]
    s = jnp.sin(ang)[None, :, None, :]

    def rope(t):
        t2 = t.reshape(B, L, H, hd // 2, 2)
        x1, x2 = t2[..., 0], t2[..., 1]
        return jnp.stack([x1 * c - x2 * s, x1 * s + x2 * c],
                         axis=-1).reshape(B, L, H, hd)

    q = rope(q)
    k = rope(k)
    attn = jnp.einsum('blhd,blgd->blhg', q, k) / math.sqrt(hd)
    attn = jax.nn.softmax(attn, axis=-1)
    out = jnp.einsum('blhg,blgd->blhd', attn, v)
    return out.reshape(B, L, D)


if __name__ == "__main__":
    B, L, D, H = 2, 8, 32, 4   # dim=32, num_heads=4, head_dim=8
    key = jax.random.PRNGKey(0)
    kx, kw, kb = jax.random.split(key, 3)
    x = jax.random.normal(kx, (B, L, D), jnp.float32)
    w_qkv = jax.random.normal(kw, (3 * D, D), jnp.float32) * 0.1  # nn.Linear weight
    b_qkv = jax.random.normal(kb, (3 * D,), jnp.float32) * 0.1    # nn.Linear bias

    # Default tiling -> block_n=8, grid=(2,): exercises the pipelined,
    # two-TensorCore path at toy shapes.
    out = cached_attention_forward(x, w_qkv, b_qkv, H)
    out = jax.block_until_ready(out)

    ref = reference_forward(x, w_qkv, b_qkv, H)
    np.testing.assert_allclose(np.asarray(out), np.asarray(ref),
                               rtol=2e-2, atol=2e-2)
    print("KERNEL_OK")
</pallas_src>

<mosaic_0001>
module attributes {stable_mosaic.version = 11 : i64} {
  func.func @fused_attention_kernel(%arg0: i32, %arg1: memref<8x32xbf16, #tpu.memory_space<vmem>>, %arg2: memref<32x96xbf16, #tpu.memory_space<vmem>>, %arg3: memref<1x96xf32, #tpu.memory_space<vmem>>, %arg4: memref<16x4xf32, #tpu.memory_space<vmem>>, %arg5: memref<4x32xf32, #tpu.memory_space<vmem>>, %arg6: memref<8x4xf32, #tpu.memory_space<vmem>>, %arg7: memref<8x4xf32, #tpu.memory_space<vmem>>, %arg8: memref<8x32xf32, #tpu.memory_space<vmem>>) attributes {dimension_semantics = [#tpu.dimension_semantics<parallel>], iteration_bounds = array<i64: 2>, scalar_prefetch = 0 : i64, scratch_operands = 0 : i64, tpu.core_type = #tpu.core_type<tc>, window_params = [{transform_indices = @transform_0, window_bounds = array<i64: 8, 32>}, {pipeline_mode = #tpu.pipeline_mode<synchronous>, transform_indices = @transform_1, window_bounds = array<i64: 32, 96>}, {pipeline_mode = #tpu.pipeline_mode<synchronous>, transform_indices = @transform_2, window_bounds = array<i64: 1, 96>}, {pipeline_mode = #tpu.pipeline_mode<synchronous>, transform_indices = @transform_3, window_bounds = array<i64: 16, 4>}, {pipeline_mode = #tpu.pipeline_mode<synchronous>, transform_indices = @transform_4, window_bounds = array<i64: 4, 32>}, {transform_indices = @transform_5, window_bounds = array<i64: 8, 4>}, {transform_indices = @transform_6, window_bounds = array<i64: 8, 4>}, {transform_indices = @transform_7, window_bounds = array<i64: 8, 32>}]} {
    %c0 = arith.constant 0 : index
    %c0_0 = arith.constant 0 : index
    %0 = vector.load %arg1[%c0, %c0_0] : memref<8x32xbf16, #tpu.memory_space<vmem>>, vector<8x32xbf16>
    %c0_1 = arith.constant 0 : index
    %c0_2 = arith.constant 0 : index
    %1 = vector.load %arg2[%c0_1, %c0_2] : memref<32x96xbf16, #tpu.memory_space<vmem>>, vector<32x96xbf16>
    %cst = arith.constant dense<0.000000e+00> : vector<8x96xf32>
    %2 = tpu.matmul %0, %1, %cst {dimension_numbers = #tpu.dot_dimension_numbers<[1], [0], [0], [1], [0, 0, 1, 1], [], []>} : vector<8x32xbf16>, vector<32x96xbf16>, vector<8x96xf32> -> vector<8x96xf32>
    %c0_3 = arith.constant 0 : index
    %c0_4 = arith.constant 0 : index
    %3 = vector.load %arg3[%c0_3, %c0_4] : memref<1x96xf32, #tpu.memory_space<vmem>>, vector<1x96xf32>
    %4 = vector.broadcast %3 : vector<1x96xf32> to vector<8x96xf32>
    %5 = arith.addf %2, %4 : vector<8x96xf32>
    %6 = vector.extract_strided_slice %5 {offsets = [0, 0], sizes = [8, 16], strides = [1, 1]} : vector<8x96xf32> to vector<8x16xf32>
    %7 = vector.extract_strided_slice %5 {offsets = [0, 16], sizes = [8, 16], strides = [1, 1]} : vector<8x96xf32> to vector<8x16xf32>
    %8 = vector.extract_strided_slice %5 {offsets = [0, 32], sizes = [8, 16], strides = [1, 1]} : vector<8x96xf32> to vector<8x16xf32>
    %9 = vector.extract_strided_slice %5 {offsets = [0, 48], sizes = [8, 16], strides = [1, 1]} : vector<8x96xf32> to vector<8x16xf32>
    %10 = vector.extract_strided_slice %5 {offsets = [0, 64], sizes = [8, 32], strides = [1, 1]} : vector<8x96xf32> to vector<8x32xf32>
    %c0_5 = arith.constant 0 : index
    %c0_6 = arith.constant 0 : index
    %11 = vector.load %arg6[%c0_5, %c0_6] : memref<8x4xf32, #tpu.memory_space<vmem>>, vector<8x4xf32>
    %c0_7 = arith.constant 0 : index
    %c0_8 = arith.constant 0 : index
    %12 = vector.load %arg7[%c0_7, %c0_8] : memref<8x4xf32, #tpu.memory_space<vmem>>, vector<8x4xf32>
    %13 = tpu.concatenate %11, %11, %11, %11 in 1 : vector<8x4xf32>, vector<8x4xf32>, vector<8x4xf32>, vector<8x4xf32> -> vector<8x16xf32>
    %14 = tpu.concatenate %12, %12, %12, %12 in 1 : vector<8x4xf32>, vector<8x4xf32>, vector<8x4xf32>, vector<8x4xf32> -> vector<8x16xf32>
    %15 = arith.mulf %6, %13 : vector<8x16xf32>
    %16 = arith.mulf %7, %14 : vector<8x16xf32>
    %17 = arith.subf %15, %16 : vector<8x16xf32>
    %18 = arith.mulf %6, %14 : vector<8x16xf32>
    %19 = arith.mulf %7, %13 : vector<8x16xf32>
    %20 = arith.addf %18, %19 : vector<8x16xf32>
    %21 = arith.mulf %8, %13 : vector<8x16xf32>
    %22 = arith.mulf %9, %14 : vector<8x16xf32>
    %23 = arith.subf %21, %22 : vector<8x16xf32>
    %24 = arith.mulf %8, %14 : vector<8x16xf32>
    %25 = arith.mulf %9, %13 : vector<8x16xf32>
    %26 = arith.addf %24, %25 : vector<8x16xf32>
    %c0_9 = arith.constant 0 : index
    %c0_10 = arith.constant 0 : index
    %27 = vector.load %arg4[%c0_9, %c0_10] : memref<16x4xf32, #tpu.memory_space<vmem>>, vector<16x4xf32>
    %c0_11 = arith.constant 0 : index
    %c0_12 = arith.constant 0 : index
    %28 = vector.load %arg5[%c0_11, %c0_12] : memref<4x32xf32, #tpu.memory_space<vmem>>, vector<4x32xf32>
    %29 = arith.mulf %17, %23 : vector<8x16xf32>
    %30 = arith.mulf %20, %26 : vector<8x16xf32>
    %31 = arith.addf %29, %30 : vector<8x16xf32>
    %cst_13 = arith.constant dense<0.000000e+00> : vector<8x4xf32>
    %32 = tpu.matmul %31, %27, %cst_13 {dimension_numbers = #tpu.dot_dimension_numbers<[1], [0], [0], [1], [0, 0, 1, 1], [], []>} : vector<8x16xf32>, vector<16x4xf32>, vector<8x4xf32> -> vector<8x4xf32>
    %c4_i32 = arith.constant 4 : i32
    %33 = tpu.dynamic_rotate %23 by %c4_i32 dim 1 : vector<8x16xf32>, i32 -> vector<8x16xf32>
    %c4_i32_14 = arith.constant 4 : i32
    %34 = tpu.dynamic_rotate %26 by %c4_i32_14 dim 1 : vector<8x16xf32>, i32 -> vector<8x16xf32>
    %35 = arith.mulf %17, %33 : vector<8x16xf32>
    %36 = arith.mulf %20, %34 : vector<8x16xf32>
    %37 = arith.addf %35, %36 : vector<8x16xf32>
    %cst_15 = arith.constant dense<0.000000e+00> : vector<8x4xf32>
    %38 = tpu.matmul %37, %27, %cst_15 {dimension_numbers = #tpu.dot_dimension_numbers<[1], [0], [0], [1], [0, 0, 1, 1], [], []>} : vector<8x16xf32>, vector<16x4xf32>, vector<8x4xf32> -> vector<8x4xf32>
    %39 = arith.maximumf %32, %38 : vector<8x4xf32>
    %c8_i32 = arith.constant 8 : i32
    %40 = tpu.dynamic_rotate %23 by %c8_i32 dim 1 : vector<8x16xf32>, i32 -> vector<8x16xf32>
    %c8_i32_16 = arith.constant 8 : i32
    %41 = tpu.dynamic_rotate %26 by %c8_i32_16 dim 1 : vector<8x16xf32>, i32 -> vector<8x16xf32>
    %42 = arith.mulf %17, %40 : vector<8x16xf32>
    %43 = arith.mulf %20, %41 : vector<8x16xf32>
    %44 = arith.addf %42, %43 : vector<8x16xf32>
    %cst_17 = arith.constant dense<0.000000e+00> : vector<8x4xf32>
    %45 = tpu.matmul %44, %27, %cst_17 {dimension_numbers = #tpu.dot_dimension_numbers<[1], [0], [0], [1], [0, 0, 1, 1], [], []>} : vector<8x16xf32>, vector<16x4xf32>, vector<8x4xf32> -> vector<8x4xf32>
    %46 = arith.maximumf %39, %45 : vector<8x4xf32>
    %c12_i32 = arith.constant 12 : i32
    %47 = tpu.dynamic_rotate %23 by %c12_i32 dim 1 : vector<8x16xf32>, i32 -> vector<8x16xf32>
    %c12_i32_18 = arith.constant 12 : i32
    %48 = tpu.dynamic_rotate %26 by %c12_i32_18 dim 1 : vector<8x16xf32>, i32 -> vector<8x16xf32>
    %49 = arith.mulf %17, %47 : vector<8x16xf32>
    %50 = arith.mulf %20, %48 : vector<8x16xf32>
    %51 = arith.addf %49, %50 : vector<8x16xf32>
    %cst_19 = arith.constant dense<0.000000e+00> : vector<8x4xf32>
    %52 = tpu.matmul %51, %27, %cst_19 {dimension_numbers = #tpu.dot_dimension_numbers<[1], [0], [0], [1], [0, 0, 1, 1], [], []>} : vector<8x16xf32>, vector<16x4xf32>, vector<8x4xf32> -> vector<8x4xf32>
    %53 = arith.maximumf %46, %52 : vector<8x4xf32>
    %cst_20 = arith.constant 0.000000e+00 : f32
    %54 = vector.broadcast %cst_20 : f32 to vector<8x4xf32>
    %cst_21 = arith.constant 0.000000e+00 : f32
    %55 = vector.broadcast %cst_21 : f32 to vector<8x32xf32>
    %56 = arith.subf %32, %53 : vector<8x4xf32>
    %57 = math.exp %56 : vector<8x4xf32>
    %58 = arith.addf %54, %57 : vector<8x4xf32>
    %cst_22 = arith.constant dense<0.000000e+00> : vector<8x32xf32>
    %59 = tpu.matmul %57, %28, %cst_22 {dimension_numbers = #tpu.dot_dimension_numbers<[1], [0], [0], [1], [0, 0, 1, 1], [], []>} : vector<8x4xf32>, vector<4x32xf32>, vector<8x32xf32> -> vector<8x32xf32>
    %60 = arith.mulf %59, %10 : vector<8x32xf32>
    %61 = arith.addf %55, %60 : vector<8x32xf32>
    %62 = arith.subf %38, %53 : vector<8x4xf32>
    %63 = math.exp %62 : vector<8x4xf32>
    %64 = arith.addf %58, %63 : vector<8x4xf32>
    %c8_i32_23 = arith.constant 8 : i32
    %65 = tpu.dynamic_rotate %10 by %c8_i32_23 dim 1 : vector<8x32xf32>, i32 -> vector<8x32xf32>
    %cst_24 = arith.constant dense<0.000000e+00> : vector<8x32xf32>
    %66 = tpu.matmul %63, %28, %cst_24 {dimension_numbers = #tpu.dot_dimension_numbers<[1], [0], [0], [1], [0, 0, 1, 1], [], []>} : vector<8x4xf32>, vector<4x32xf32>, vector<8x32xf32> -> vector<8x32xf32>
    %67 = arith.mulf %66, %65 : vector<8x32xf32>
    %68 = arith.addf %61, %67 : vector<8x32xf32>
    %69 = arith.subf %45, %53 : vector<8x4xf32>
    %70 = math.exp %69 : vector<8x4xf32>
    %71 = arith.addf %64, %70 : vector<8x4xf32>
    %c16_i32 = arith.constant 16 : i32
    %72 = tpu.dynamic_rotate %10 by %c16_i32 dim 1 : vector<8x32xf32>, i32 -> vector<8x32xf32>
    %cst_25 = arith.constant dense<0.000000e+00> : vector<8x32xf32>
    %73 = tpu.matmul %70, %28, %cst_25 {dimension_numbers = #tpu.dot_dimension_numbers<[1], [0], [0], [1], [0, 0, 1, 1], [], []>} : vector<8x4xf32>, vector<4x32xf32>, vector<8x32xf32> -> vector<8x32xf32>
    %74 = arith.mulf %73, %72 : vector<8x32xf32>
    %75 = arith.addf %68, %74 : vector<8x32xf32>
    %76 = arith.subf %52, %53 : vector<8x4xf32>
    %77 = math.exp %76 : vector<8x4xf32>
    %78 = arith.addf %71, %77 : vector<8x4xf32>
    %c24_i32 = arith.constant 24 : i32
    %79 = tpu.dynamic_rotate %10 by %c24_i32 dim 1 : vector<8x32xf32>, i32 -> vector<8x32xf32>
    %cst_26 = arith.constant dense<0.000000e+00> : vector<8x32xf32>
    %80 = tpu.matmul %77, %28, %cst_26 {dimension_numbers = #tpu.dot_dimension_numbers<[1], [0], [0], [1], [0, 0, 1, 1], [], []>} : vector<8x4xf32>, vector<4x32xf32>, vector<8x32xf32> -> vector<8x32xf32>
    %81 = arith.mulf %80, %79 : vector<8x32xf32>
    %82 = arith.addf %75, %81 : vector<8x32xf32>
    %83 = tpu.reciprocal %78 {approx = true} : vector<8x4xf32> -> vector<8x4xf32>
    %cst_27 = arith.constant dense<0.000000e+00> : vector<8x32xf32>
    %84 = tpu.matmul %83, %28, %cst_27 {dimension_numbers = #tpu.dot_dimension_numbers<[1], [0], [0], [1], [0, 0, 1, 1], [], []>} : vector<8x4xf32>, vector<4x32xf32>, vector<8x32xf32> -> vector<8x32xf32>
    %85 = arith.mulf %82, %84 : vector<8x32xf32>
    %c0_28 = arith.constant 0 : index
    %c0_29 = arith.constant 0 : index
    %86 = vector.load %arg8[%c0_28, %c0_29] : memref<8x32xf32, #tpu.memory_space<vmem>>, vector<8x32xf32>
    tpu.vector_store %arg8[%c0_28, %c0_29], %85 {strides = array<i32>} : memref<8x32xf32, #tpu.memory_space<vmem>>, vector<8x32xf32>,
    return
  }
  func.func @transform_0(%arg0: i32) -> (i32, i32) {
    %c0_i32 = arith.constant 0 : i32
    %c0_i32_0 = arith.constant 0 : i32
    return %arg0, %c0_i32 : i32, i32
  }
  func.func @transform_1(%arg0: i32) -> (i32, i32) {
    %c0_i32 = arith.constant 0 : i32
    %c0_i32_0 = arith.constant 0 : i32
    %c0_i32_1 = arith.constant 0 : i32
    return %c0_i32, %c0_i32_0 : i32, i32
  }
  func.func @transform_2(%arg0: i32) -> (i32, i32) {
    %c0_i32 = arith.constant 0 : i32
    %c0_i32_0 = arith.constant 0 : i32
    %c0_i32_1 = arith.constant 0 : i32
    return %c0_i32, %c0_i32_0 : i32, i32
  }
  func.func @transform_3(%arg0: i32) -> (i32, i32) {
    %c0_i32 = arith.constant 0 : i32
    %c0_i32_0 = arith.constant 0 : i32
    %c0_i32_1 = arith.constant 0 : i32
    return %c0_i32, %c0_i32_0 : i32, i32
  }
  func.func @transform_4(%arg0: i32) -> (i32, i32) {
    %c0_i32 = arith.constant 0 : i32
    %c0_i32_0 = arith.constant 0 : i32
    %c0_i32_1 = arith.constant 0 : i32
    return %c0_i32, %c0_i32_0 : i32, i32
  }
  func.func @transform_5(%arg0: i32) -> (i32, i32) {
    %c0_i32 = arith.constant 0 : i32
    %c0_i32_0 = arith.constant 0 : i32
    return %arg0, %c0_i32 : i32, i32
  }
  func.func @transform_6(%arg0: i32) -> (i32, i32) {
    %c0_i32 = arith.constant 0 : i32
    %c0_i32_0 = arith.constant 0 : i32
    return %arg0, %c0_i32 : i32, i32
  }
  func.func @transform_7(%arg0: i32) -> (i32, i32) {
    %c0_i32 = arith.constant 0 : i32
    %c0_i32_0 = arith.constant 0 : i32
    return %arg0, %c0_i32 : i32, i32
  }
}

</mosaic_0001>

<bundles_post_ra>
// kernel: tpu_custom_call.1
= control target key start
LH: loop header
LB: loop body
LE: loop exit
PB: predicated region body
PF: predicated region fallthrough
CT: control target
= control target key end

     0   :  { %12 = vsyncpa [#allocation3], 0  ;;  %s1851_s0 = inlined_call_operand.vmem [shape: bf16[16,32], index: 0, kind: input, shape index: {}]   ;;  %s1852_s1 = inlined_call_operand.vmem [shape: bf16[32,96], index: 1, kind: input, shape index: {}]   ;;  %s1853_s2 = inlined_call_operand.vmem [shape: f32[1,96], index: 2, kind: input, shape index: {}]   ;;  %s1854_s3 = inlined_call_operand.vmem [shape: f32[16,4], index: 3, kind: input, shape index: {}]   ;;  %s1855_s4 = inlined_call_operand.vmem [shape: f32[4,32], index: 4, kind: input, shape index: {}]   ;;  %s1856_s5 = inlined_call_operand.vmem [shape: f32[16,4], index: 5, kind: input, shape index: {}]   ;;  %s1857_s6 = inlined_call_operand.vmem [shape: f32[16,4], index: 6, kind: input, shape index: {}]   ;;  %s1858_s7 = inlined_call_operand.hbm [shape: f32[16,32], index: 7, kind: output, shape index: {}]  }
   0x1   :  { %14 = vsyncpa [#allocation3 + $0x1], 0  ;;  %s1622_s24 = smov 0   ;;  %s1624_s25 = smov 0  }
   0x2   :  { %s1626_s26 = smov 0   ;;  %s1628_s27 = smov 0  }
   0x3 LB: > { %s1643_s28 = sadd.s32 4294967295, %s1564_s27   ;;  %s1322_s29 = sadd.s32 4294967294, %s1564_s27   ;;  %s1564_s27 = sphi %s1628_s27, %s1864_s27   ;;  %s1560_s26 = sphi %s1626_s26, %s1863_s26   ;;  %s1556_s25 = sphi %s1624_s25, %s1862_s25   ;;  %s1552_s24 = sphi %s1622_s24, %s1861_s24  }
   0x4   : > { %s1647_s30 = sadd.s32 1, %s1564_s27   ;;  %s189_s8 = sadd.s32 1, %s1560_s26 }
   0x5   : > { %s186_s9 = ssub.s32 %s1564_s27, %s1647_s30  ;;  %p199_p0 = scmp.ne.s32.totalorder %s1560_s26, %s1556_s25 }
   0x6   : > { %p187_p1 = scmp.eq.s32.totalorder %s186_s9, 0  ;;  %p200_p2 = scmp.eq.s32.totalorder %s1643_s28, 1 }
   0x7   : > { %p205_p3 = scmp.ne.s32.totalorder %s1556_s25, %s1552_s24  ;;  %p206_p4 = scmp.eq.s32.totalorder %s1322_s29, 1 }
   0x8   : > { %s1658_s10 = scalar_select %p187_p1, %s1560_s26, %s189_s8  }
   0x9   : > { %p1660_p5 = por %p200_p2, %p199_p0  ;;  %p1664_p6 = por %p206_p4, %p205_p3 }
   0xa   : > { %p1325_p7 = scmp.ge.s32.totalorder %s1564_s27, 1  ;;  %p257_p8 = scmp.lt.s32.totalorder %s1564_s27, 3 }
   0xc   : > { %p258_p9 = pnand %p1325_p7, %p257_p8 }
   0xd   : > { %p296_p10 = scmp.lt.s32.totalorder (!%p258_p9), %s1643_s28, 1  ;;  %s1568_s15 = smov (!%p258_p9), 8  }
   0xe   : > { %261 = sbr.rel (%p258_p9) target bundleno = 1299 (0x513), region = 48  ;;  %s1569_s16 = smov (!%p258_p9), 4  }
   0xf   : > { %s1574_s23 = smov (!%p258_p9), 96   ;;  %s1575_s29 = smov (!%p258_p9), 16  }
  0x13   : > { %v1492_v0 = vld [vmem:[%s1852_s1 + $0x8] sm:$0xff]   ;;  %v1566_v1 = vmov 0.0   ;;  %v1493_v2 = vld [vmem:[%s1852_s1] sm:$0xff]   ;;  %s297_s17 = scalar_select %p296_p10, %s1643_s28, 1  ;;  %vm1567_vm0 = vmmov 0   ;;  %vm333_vm1 = vcmask 261120  }
  0x14   : > { %1377 = vmatprep.subr.bf16.mxu0 %v1566_v1  ;;  %1385 = vmatprep.subr.mxu1 %v1566_v1  ;;  %vm389_vm2 = vcmask 31744   ;;  %vm391_vm3 = vcmask 64512   ;;  %vm393_vm4 = vcmask 97280   ;;  %v1330_v22 = vld [vmem:[%s1853_s2] ss:$0 sm:$0xff]  ;;  %v1726_v38 = vld [vmem:[%s1854_s3 + $0x8] sm:$0xff] }
  0x15   : > { %1378 = vmatpush3.bf16.msra.mxu0 %v1492_v0  ;;  %1381 = vmatprep.mubr.msk.bf16.mxu0 %vm1567_vm0, %v1566_v1  ;;  %s1328_s18 = sshll.u32 %s297_s17, 3  ;;  %s1327_s19 = sshll.u32 %s297_s17, 2  ;;  %vm544_vm5 = vcmask 1047680   ;;  %v1734_v39 = vld [vmem:[%s1854_s3] sm:$0xff]  ;;  %vm470_vm6 = vcmask 130048   ;;  %vm815_vm7 = vcmask 1043456  }
  0x16   : > { %1379 = vmatprep.subr.bf16.mxu0 %v1566_v1  ;;  %1389 = vmatprep.mubr.msk.f32.mxu1 %vm1567_vm0, %v1566_v1  ;;  %s303_s22 = scalar_lea.vmem %s1856_s5, %s1328_s18  ;;  %s299_s8 = scalar_lea.vmem %s1851_s0, %s1327_s19  ;;  %vm899_vm8 = vcmask 1047808  }
  0x17   : > { %v377_v3 = vld [vmem:[%s303_s22] sm:$0xff]  ;;  %s307_s14 = scalar_lea.vmem %s1857_s6, %s1328_s18  ;;  %s1570_s17 = smov 12   ;;  %1386 = vmatpush3.msra.mxu1 %v1726_v38 }
  0x18   : > { %v309_v4 = vld [vmem:[%s299_s8] sm:$0xf]  ;;  %383 = vrot.lane.b32.xlu1 %v377_v3, %s1568_s15  ;;  %380 = vrot.lane.b32.xlu0 %v377_v3, %s1569_s16  ;;  %s1571_s18 = smov 48   ;;  %s1572_s19 = smov 32  }
  0x19   : > { %1380 = vmatpush3.bf16.msra.mxu0 %v1493_v2  ;;  %v378_v5 = vld [vmem:[%s307_s14] sm:$0xff]  ;;  %s1573_s22 = smov 112   ;;  %1387 = vmatprep.subr.mxu1 %v1566_v1 }
  0x1a   : > { %1406 = vmatprep.subr.mxu0 %v1566_v1  ;;  %1388 = vmatpush3.msra.mxu1 %v1734_v39 }
  0x1b   : > { %1392 = vmatprep.subr.mxu1 %v1566_v1 }
  0x1c   : > { %1382 = vmatmul.mubr.msk.bf16.vlgmr.msra.gmra.mxu0 %vm333_vm1, %v309_v4  ;;  %399 = vrot.lane.b32.xlu1 %v378_v5, %s1568_s15  ;;  %s1576_s15 = smov 116  }
  0x1d   : > { %1410 = vmatprep.mubr.msk.f32.mxu0 %vm1567_vm0, %v1566_v1  ;;  %396 = vrot.lane.b32.xlu0 %v378_v5, %s1569_s16  ;;  %s1577_s16 = smov 120  }
  0x1e   : > { %1407 = vmatpush3.msra.mxu0 %v1726_v38 }
  0x1f   : > { %1408 = vmatprep.subr.mxu0 %v1566_v1 }
  0x20   : > { %402 = vrot.lane.b32.xlu1 %v378_v5, %s1570_s17  ;;  %1409 = vmatpush3.msra.mxu0 %v1734_v39 }
  0x21   : > { %386 = vrot.lane.b32.xlu0 %v377_v3, %s1570_s17  ;;  %1418 = vmatprep.subr.mxu0 %v1566_v1  ;;  %s1578_s17 = smov 124  }
  0x8a   : > { %v384_v6 = vpop.permute.xlu1 %383  ;;  %v381_v7 = vpop.permute.xlu0 %380 }
  0x8b   : > { %v390_v10 = vsel %vm389_vm2, %v377_v3, %v381_v7 }
  0x8c   : > { %v392_v14 = vsel %vm391_vm3, %v390_v10, %v384_v6 }
  0x8e   : > { %v400_v8 = vpop.permute.xlu1 %399 }
  0x8f   : > { %v397_v9 = vpop.permute.xlu0 %396 }
  0x90   : > { %v405_v11 = vsel %vm389_vm2, %v378_v5, %v397_v9 }
  0x91   : > { %v406_v13 = vsel %vm391_vm3, %v405_v11, %v400_v8 }
  0x92   : > { %v403_v12 = vpop.permute.xlu1 %402 }
  0x93   : > { %v387_v15 = vpop.permute.xlu0 %386  ;;  %v1700_v16 = vsel %vm393_vm4, %v406_v13, %v403_v12 }
  0x94   : > { %v1702_v17 = vsel %vm393_vm4, %v392_v14, %v387_v15  ;;  %434 = vrot.lane.b32.xlu0 %v1700_v16, %s1571_s18 }
  0x95   : > { %447 = vrot.lane.b32.xlu1 %v1702_v17, %s1571_s18  ;;  %s1579_s18 = smov 64  }
  0x98   : > { %430 = vrot.lane.b32.xlu0 %v1702_v17, %s1572_s19 }
  0x99   : > { %443 = vrot.lane.b32.xlu1 %v1700_v16, %s1572_s19 }
  0xdc   : > { %v371_v18 = vpop.f32.mrf.mxu0 }
  0xdd   : > { %v1713_v23 = vadd.f32 %v1330_v22, %v371_v18 }
  0xde   : > { %v1383_v19 = vpop.f32.mrf.mxu0 }
  0xdf   : > { %v419_v52 = vmul.f32 %v1700_v16, %v1713_v23  ;;  %v408_v53 = vmul.f32 %v1702_v17, %v1713_v23 }
  0xe0   : > { %v374_v20 = vpop.f32.mrf.mxu0 }
  0xe2   : > { %v1384_v21 = vpop.f32.mrf.mxu0 }
 0x106   : > { %v435_v25 = vpop.permute.xlu0 %434 }
 0x107   : > { %v448_v24 = vpop.permute.xlu1 %447  ;;  %v437_v27 = vmul.f32 %v435_v25, %v1713_v23 }
 0x108   : > { %v450_v26 = vmul.f32 %v448_v24, %v1713_v23 }
 0x109   : > { %439 = vrot.lane.b32.xlu0 %v437_v27, %s1573_s22 }
 0x10a   : > { %452 = vrot.lane.b32.xlu1 %v450_v26, %s1573_s22  ;;  %v431_v29 = vpop.permute.xlu0 %430 }
 0x10b   : > { %v444_v28 = vpop.permute.xlu1 %443  ;;  %v433_v31 = vmul.f32 %v431_v29, %v1713_v23 }
 0x10c   : > { %v446_v30 = vmul.f32 %v444_v28, %v1713_v23 }
 0x17b   : > { %v440_v33 = vpop.permute.xlu0 %439 }
 0x17c   : > { %v453_v32 = vpop.permute.xlu1 %452  ;;  %v442_v35 = vsub.f32 %v433_v31, %v440_v33 }
 0x17d   : > { %v455_v34 = vadd.f32 %v453_v32, %v446_v30 }
 0x17e   : > { %460 = vrot.lane.b32.xlu0 %v442_v35, %s1574_s23 }
 0x17f   : > { %465 = vrot.lane.b32.xlu1 %v455_v34, %s1574_s23 }
 0x1f0   : > { %v461_v37 = vpop.permute.xlu0 %460 }
 0x1f1   : > { %v466_v36 = vpop.permute.xlu1 %465  ;;  %545 = vrot.lane.b32.xlu0 %v461_v37, %s1575_s29 }
 0x1f2   : > { %551 = vrot.lane.b32.xlu1 %v466_v36, %s1575_s29 }
 0x1f5   : > { %410 = vrot.lane.b32.xlu0 %v1700_v16, %s1575_s29  ;;  %v458_v16 = vld [vmem:[%s1855_s4] sm:$0xf] }
 0x1f6   : > { %421 = vrot.lane.b32.xlu1 %v1702_v17, %s1575_s29 }
 0x263   : > { %v546_v41 = vpop.permute.xlu0 %545 }
 0x264   : > { %v552_v40 = vpop.permute.xlu1 %551  ;;  %v547_v43 = vsel %vm544_vm5, %v546_v41, %v461_v37 }
 0x265   : > { %v553_v42 = vsel %vm544_vm5, %v552_v40, %v466_v36  ;;  %548 = vrot.lane.b32.xlu0 %v547_v43, %s1575_s29 }
 0x266   : > { %554 = vrot.lane.b32.xlu1 %v553_v42, %s1575_s29  ;;  %s1349_s29 = sshll.u32 %s1643_s28, 7  ;;  %s1581_s28 = smov [#allocation2]  }
 0x267   : > { %v411_v45 = vpop.permute.xlu0 %410 }
 0x268   : > { %v422_v44 = vpop.permute.xlu1 %421  ;;  %v413_v47 = vmul.f32 %v411_v45, %v1713_v23 }
 0x269   : > { %v424_v46 = vmul.f32 %v422_v44, %v1713_v23 }
 0x26a   : > { %415 = vrot.lane.b32.xlu0 %v413_v47, %s1573_s22 }
 0x26b   : > { %426 = vrot.lane.b32.xlu1 %v424_v46, %s1573_s22 }
 0x2d7   : > { %v549_v49 = vpop.permute.xlu0 %548 }
 0x2d8   : > { %v555_v48 = vpop.permute.xlu1 %554  ;;  %v550_v51 = vsel %vm544_vm5, %v549_v49, %v461_v37 }
 0x2d9   : > { %v556_v50 = vsel %vm544_vm5, %v555_v48, %v466_v36  ;;  %558 = vrot.lane.b32.xlu0 %v550_v51, %s1576_s15 }
 0x2da   : > { %563 = vrot.lane.b32.xlu1 %v556_v50, %s1576_s15  ;;  %s1815_s15 = scalar_lea.hbm %s1858_s7, %s1349_s29 }
 0x2dc   : > { %v416_v55 = vpop.permute.xlu0 %415 }
 0x2dd   : > { %v427_v54 = vpop.permute.xlu1 %426  ;;  %v418_v57 = vsub.f32 %v408_v53, %v416_v55  ;;  %642 = vrot.lane.b32.xlu0 %v550_v51, %s1577_s16 }
 0x2de   : > { %v429_v56 = vadd.f32 %v427_v54, %v419_v52  ;;  %646 = vrot.lane.b32.xlu1 %v556_v50, %s1577_s16 }
 0x2df   : > { %v463_v59 = vmul.f32 %v461_v37, %v418_v57 }
 0x2e0   : > { %v468_v58 = vmul.f32 %v466_v36, %v429_v56 }
 0x2e1   : > { %725 = vrot.lane.b32.xlu0 %v550_v51, %s1578_s17 }
 0x2e2   : > { %729 = vrot.lane.b32.xlu1 %v556_v50, %s1578_s17  ;;  %v469_v60 = vadd.f32 %v468_v58, %v463_v59 }
 0x2e4   : > { %1390 = vmatmul.mubr.msk.f32.vlgmr.msra.gmra.mxu1 %vm470_vm6, %v469_v60 }
 0x2e5   : > { %1393 = vmatpush3.msra.mxu1 %v1726_v38  ;;  %1396 = vmatprep.mubr.msk.f32.mxu1 %vm1567_vm0, %v1566_v1 }
 0x2e6   : > { %890 = vrot.lane.b32.xlu0 %v1713_v23, %s1579_s18  ;;  %1394 = vmatprep.subr.mxu1 %v1566_v1  ;;  %s1508_s18 = sshll.u32 %s1581_s28, 4  ;;  %s1509_s18 = int_to_ptr.vmem [resolvable:$false] %s1508_s18 }
 0x2e7   : > { %1395 = vmatpush3.msra.mxu1 %v1734_v39  ;;  %s1510_s20 = scalar_lea.vmem %s1509_s18, 256 }
 0x2e8   : > { %1399 = vmatprep.subr.mxu1 %v1566_v1 }
 0x34b   : > { %v559_v62 = vpop.permute.xlu0 %558 }
 0x34c   : > { %v564_v61 = vpop.permute.xlu1 %563  ;;  %v561_v0 = vmul.f32 %v559_v62, %v418_v57 }
 0x34d   : > { %v566_v63 = vmul.f32 %v564_v61, %v429_v56 }
 0x34f   : > { %v567_v2 = vadd.f32 %v566_v63, %v561_v0  ;;  %v643_v4 = vpop.permute.xlu0 %642 }
 0x350   : > { %v647_v3 = vpop.permute.xlu1 %646  ;;  %v645_v6 = vmul.f32 %v643_v4, %v418_v57 }
 0x351   : > { %v649_v5 = vmul.f32 %v647_v3, %v429_v56  ;;  %1397 = vmatmul.mubr.msk.f32.vlgmr.msra.gmra.mxu1 %vm470_vm6, %v567_v2 }
 0x352   : > { %1400 = vmatpush3.msra.mxu1 %v1726_v38  ;;  %1403 = vmatprep.mubr.msk.f32.mxu1 %vm1567_vm0, %v1566_v1 }
 0x353   : > { %v650_v7 = vadd.f32 %v649_v5, %v645_v6  ;;  %1401 = vmatprep.subr.mxu1 %v1566_v1  ;;  %v726_v9 = vpop.permute.xlu0 %725 }
 0x354   : > { %v730_v8 = vpop.permute.xlu1 %729  ;;  %1402 = vmatpush3.msra.mxu1 %v1734_v39  ;;  %v728_v11 = vmul.f32 %v726_v9, %v418_v57 }
 0x355   : > { %v732_v10 = vmul.f32 %v730_v8, %v429_v56  ;;  %1404 = vmatmul.mubr.msk.f32.vlgmr.msra.gmra.mxu1 %vm470_vm6, %v650_v7  ;;  %1413 = vmatprep.subr.mxu1 %v1566_v1 }
 0x356   : > { %1415 = vmatprep.mubr.msk.f32.mxu1 %vm1567_vm0, %v1566_v1  ;;  %1414 = vmatpush3.msk.msra.mxu1 %vm815_vm7, %v458_v16 }
 0x357   : > { %v733_v12 = vadd.f32 %v732_v10, %v728_v11  ;;  %1423 = vmatprep.subr.mxu1 %v1566_v1 }
 0x358   : > { %v1773_v13 = vpop.permute.xlu0 %890 }
 0x359   : > { %900 = vrot.lane.b32.xlu1 %v1773_v13, %s1572_s19  ;;  %1411 = vmatmul.mubr.msk.f32.vlgmr.msra.gmra.mxu0 %vm470_vm6, %v733_v12 }
 0x35a   : > { %1420 = vmatprep.mubr.msk.f32.mxu0 %vm1567_vm0, %v1566_v1  ;;  %1419 = vmatpush3.msk.msra.mxu0 %vm815_vm7, %v458_v16 }
 0x35b   : > { %1428 = vmatprep.subr.mxu0 %v1566_v1 }
 0x3a4   : > { %v540_v14 = vpop.f32.mrf.mxu1 }
 0x3a6   : > { %v1391_v15 = vpop.f32.mrf.mxu1 }
 0x3cb   : > { %v901_v17 = vpop.permute.xlu1 %900 }
 0x3cc   : > { %v902_v18 = vsel %vm899_vm8, %v901_v17, %v1773_v13 }
 0x3cd   : > { %903 = vrot.lane.b32.xlu0 %v902_v18, %s1572_s19  ;;  %s1580_s19 = smov 104  }
 0x411   : > { %v637_v19 = vpop.f32.mrf.mxu1 }
 0x412   : > { %v641_v22 = vmax.f32 %v540_v14, %v637_v19 }
 0x413   : > { %v1398_v20 = vpop.f32.mrf.mxu1 }
 0x415   : > { %v720_v21 = vpop.f32.mrf.mxu1 }
 0x416   : > { %v724_v24 = vmax.f32 %v641_v22, %v720_v21 }
 0x417   : > { %v1405_v23 = vpop.f32.mrf.mxu1 }
 0x419   : > { %v803_v25 = vpop.f32.mrf.mxu0 }
 0x41a   : > { %v807_v26 = vmax.f32 %v724_v24, %v803_v25 }
 0x41b   : > { %v1412_v27 = vpop.f32.mrf.mxu0 }
 0x41c   : > { %v808_v28 = vsub.f32 %v540_v14, %v807_v26  ;;  %v895_v29 = vsub.f32 %v637_v19, %v807_v26  ;;  %v985_v30 = vsub.f32 %v720_v21, %v807_v26  ;;  %v1067_v31 = vsub.f32 %v803_v25, %v807_v26 }
 0x41e   : > { %v809_v32 = vmul.f32 1.442695, %v808_v28  ;;  %v896_v33 = vmul.f32 1.442695, %v895_v29  ;;  %v986_v34 = vmul.f32 1.442695, %v985_v30 }
 0x41f   : > { %v1068_v35 = vmul.f32 1.442695, %v1067_v31 }
 0x420   : > { %1494 = vpow2.f32 %v809_v32 }
 0x421   : > { %1496 = vpow2.f32 %v896_v33 }
 0x422   : > { %1498 = vpow2.f32 %v986_v34 }
 0x423   : > { %1500 = vpow2.f32 %v1068_v35 }
 0x42d   : > { %v1495_v36 = vpop.eup %1494 }
 0x42e   : > { %v1497_v37 = vpop.eup %1496  ;;  %1416 = vmatmul.mubr.msk.f32.vlgmr.msra.gmra.mxu1 %vm389_vm2, %v1495_v36 }
 0x42f   : > { %v898_v38 = vadd.f32 %v1497_v37, %v1495_v36  ;;  %1421 = vmatmul.mubr.msk.f32.vlgmr.msra.gmra.mxu0 %vm389_vm2, %v1497_v37  ;;  %1424 = vmatpush3.msk.msra.mxu1 %vm815_vm7, %v458_v16  ;;  %v1499_v39 = vpop.eup %1498 }
 0x430   : > { %1425 = vmatprep.mubr.msk.f32.mxu1 %vm1567_vm0, %v1566_v1  ;;  %1429 = vmatpush3.msk.msra.mxu0 %vm815_vm7, %v458_v16  ;;  %v1501_v41 = vpop.eup %1500 }
 0x431   : > { %v988_v40 = vadd.f32 %v1499_v39, %v898_v38  ;;  %1430 = vmatprep.mubr.msk.f32.mxu0 %vm1567_vm0, %v1566_v1  ;;  %1433 = vmatprep.subr.mxu1 %v1566_v1 }
 0x432   : > { %1426 = vmatmul.mubr.msk.f32.vlgmr.msra.gmra.mxu1 %vm389_vm2, %v1499_v39 }
 0x433   : > { %v1070_v42 = vadd.f32 %v1501_v41, %v988_v40  ;;  %1431 = vmatmul.mubr.msk.f32.vlgmr.msra.gmra.mxu0 %vm389_vm2, %v1501_v41  ;;  %1434 = vmatpush3.msk.msra.mxu1 %vm815_vm7, %v458_v16 }
 0x434   : > { %1435 = vmatprep.mubr.msk.f32.mxu1 %vm1567_vm0, %v1566_v1 }
 0x435   : > { %1502 = vrcp.f32 %v1070_v42 }
 0x43f   : > { %v904_v43 = vpop.permute.xlu0 %903 }
 0x440   : > { %v905_v44 = vsel %vm899_vm8, %v904_v43, %v1773_v13 }
 0x441   : > { %1062 = vrot.lane.b32.xlu0 %v905_v44, %s1573_s22  ;;  %980 = vrot.lane.b32.xlu1 %v905_v44, %s1580_s19  ;;  %s293_s22 = sand.u32 1, %s1556_s25  }
 0x442   : > { %v1503_v45 = vpop.eup %1502  ;;  %s1326_s23 = sshll.u32 %s293_s22, 3 }
 0x443   : > { %1436 = vmatmul.mubr.msk.f32.vlgmr.msra.gmra.mxu1 %vm389_vm2, %v1503_v45  ;;  %s295_s8 = scalar_lea.vmem [#allocation2], %s1326_s23 }
 0x444   : > { %s1239_s9 = sshll.u32 %s295_s8, 4  ;;  %s1240_s9 = int_to_ptr.vmem [resolvable:$true] %s1239_s9 }
 0x445   : > { %1144 = vrot.lane.b32.xlu1 %v905_v44, %s1577_s16  ;;  %s1226_s16 = scalar_lea.sflag [#allocation3], %s293_s22  ;;  %s1504_s17 = scalar_lea.vmem %s1240_s9, 128 }
 0x446   : > { %p1505_p11 = scmp.ne.s32.totalorder %s1240_s9, %s1504_s17  ;;  %p1511_p0 = scmp.lt.s32.totalorder %s1240_s9, %s1509_s18 }
 0x447   : > { %p1512_p1 = scmp.lt.s32.totalorder %s1510_s20, %s1504_s17 }
 0x448   : > { %p1506_p12 = pnand %p1505_p11, %p1660_p5 }
 0x449   : > { %p1513_p2 = por %p1512_p1, %p1511_p0 }
 0x44a   : > { %p1507_p13 = pneg %p1506_p12 }
 0x44c   : > { %p1514_p3 = pnand %p1513_p2, %p1507_p13 }
 0x4b3   : > { %v981_v53 = vpop.permute.xlu1 %980  ;;  %v1063_v56 = vpop.permute.xlu0 %1062 }
 0x4b7   : > { %v1145_v60 = vpop.permute.xlu1 %1144 }
 0x4ee   : > { %v885_v46 = vpop.f32.mrf.mxu1 }
 0x4ef   : > { %v975_v47 = vpop.f32.mrf.mxu0  ;;  %v893_v54 = vmul.f32 %v1773_v13, %v885_v46 }
 0x4f0   : > { %v1417_v48 = vpop.f32.mrf.mxu1  ;;  %v983_v55 = vmul.f32 %v981_v53, %v975_v47 }
 0x4f1   : > { %v1422_v49 = vpop.f32.mrf.mxu0 }
 0x4f2   : > { %v1058_v1 = vpop.f32.mrf.mxu1  ;;  %v984_v58 = vadd.f32 %v983_v55, %v893_v54 }
 0x4f3   : > { %v1140_v50 = vpop.f32.mrf.mxu0  ;;  %v1065_v57 = vmul.f32 %v1063_v56, %v1058_v1 }
 0x4f4   : > { %v1427_v51 = vpop.f32.mrf.mxu1  ;;  %v1147_v61 = vmul.f32 %v1145_v60, %v1140_v50 }
 0x4f5   : > { %v1432_v52 = vpop.f32.mrf.mxu0  ;;  %v1066_v59 = vadd.f32 %v1065_v57, %v984_v58 }
 0x4f7   : > { %v1148_v62 = vadd.f32 %v1147_v61, %v1066_v59 }
 0x503   : > { %v1219_v63 = vpop.f32.mrf.mxu1 }
 0x504   : > { %v1223_v0 = vmul.f32 %v1219_v63, %v1148_v62 }
 0x505   : > { %v1437_v2 = vpop.f32.mrf.mxu1 }
 0x506   : > { %1224 = vst.msk [vmem:[%s295_s8] sm:$0xff] %vm333_vm1, %v1223_v0 }
 0x507   : > { %1517 = shalt.err (!%p1514_p3)
}
 0x508   : > { %s1518_s21 = scalar_lea.hbm %s1815_s15, 128  ;;  %s1522_s23 = scalar_lea.hbm %s1858_s7, 256 }
 0x509   : > { %p1519_p4 = scmp.ne.s32.totalorder %s1815_s15, %s1518_s21  ;;  %p1523_p9 = scmp.lt.s32.totalorder %s1815_s15, %s1858_s7 }
 0x50a   : > { %p1524_p10 = scmp.lt.s32.totalorder %s1522_s23, %s1518_s21 }
 0x50b   : > { %p1520_p7 = pnand %p1519_p4, %p1660_p5 }
 0x50c   : > { %p1525_p11 = por %p1524_p10, %p1523_p9 }
 0x50d   : > { %p1521_p8 = pneg %p1520_p7 }
 0x50f   : > { %p1526_p12 = pnand %p1525_p11, %p1521_p8 }
 0x511   : > { %1529 = shalt.err (!%p1526_p12)
}
 0x512   : > { %1438 = dma.vmem_to_hbm [thread:$0]  (%p1660_p5), %s1240_s9, 128, %s1815_s15, %s1226_s16  }
 0x513 PF: > { %p1444_p13 = scmp.ge.s32.totalorder %s1564_s27, 2  ;;  %s1251_s13 = sand.u32 1, %s1552_s24  }
 0x514   : > { %s1252_s14 = scalar_lea.sflag [#allocation3], %s1251_s13 }
 0x515   : > { %p1441_p0 = pnand %p1444_p13, %p1664_p6 }
 0x517   : > { %p1442_p1 = pneg %p1441_p0 }
 0x519   : > { %1547 = dma.done.wait (%p1442_p1), %s1252_s14, 128  }
 0x51a   : > { %1549 = vsyncadd (%p1442_p1), %s1252_s14, 4294967168  ;;  %p17_p2 = scmp.ge.s32.totalorder %s1647_s30, 4   ;;  %s1861_s24 = smov %s1556_s25 }
 0x51b   : > { %s1862_s25 = smov %s1560_s26  ;;  %s1863_s26 = smov %s1658_s10 }
 0x51c   : > { %s1864_s27 = smov %s1647_s30  ;;  %19 = sbr.rel (!%p17_p2) target bundleno = 3 (0x3), region = 89 }
 0x521   :  { %1257 = vsyncpa [#allocation3], 1 }
 0x522   :  { %1259 = vsyncpa [#allocation3 + $0x1], 1 }

</bundles_post_ra>
